<compile_context>
chip_gen: v5e
topology: v5e:2x2
jax: 0.10.0
libtpu: 0.0.40
codegen_flags: <defaults>
</compile_context>

<pallas_src>
import functools
from typing import Any, NamedTuple

import jax
import jax.numpy as jnp
from jax.experimental import pallas as pl
from jax.experimental.pallas import tpu as pltpu


def _round_up(x, m):
    return (x + m - 1) // m * m


# ---------------------------------------------------------------------------
# Kernels
# ---------------------------------------------------------------------------

def _kernel_class_major(idx_ref, ftT_ref, b1T_ref, w2T_ref, b2T_ref, out_ref):
    """Transposed layout: classes on sublanes, tokens on lanes (num_classes < 128).

    idx_ref : (1, tile_n)          int32   token indices (padded tokens = -1)
    ftT_ref : (hidden, c_in_pad)   mxu dt  (embedding_table @ W1)^T, class-padded
    b1T_ref : (hidden, 1)          f32
    w2T_ref : (c_out_pad, hidden)  mxu dt  W2^T, class-padded on rows
    b2T_ref : (c_out_pad, 1)       f32
    out_ref : (c_out_pad, tile_n)  out dt  logits^T (lane-dense over tokens)
    """
    tile_n = idx_ref.shape[1]
    c_in_pad = ftT_ref.shape[1]

    idx = idx_ref[...]                                              # (1, tile_n)
    class_iota = jax.lax.broadcasted_iota(jnp.int32, (c_in_pad, tile_n), 0)
    # One-hot built directly in the MXU operand dtype (0/1 exact in bf16).
    # TODO(synk): out-of-range indices silently give a zero embedding row,
    # whereas torch.nn.Embedding would raise.
    onehot_t = (class_iota == idx).astype(ftT_ref.dtype)            # (c_in_pad, tile_n)

    # h^T = tanh(ft^T @ onehot^T + b1): one MXU pass, f32 accumulate.
    pre = jnp.dot(ftT_ref[...], onehot_t,
                  preferred_element_type=jnp.float32) + b1T_ref[...]
    h_t = jnp.tanh(pre)                                             # (hidden, tile_n) f32

    # logits^T = W2^T @ h^T + b2, stored in the (possibly bf16) output dtype.
    logits_t = jnp.dot(w2T_ref[...], h_t.astype(w2T_ref.dtype),
                       preferred_element_type=jnp.float32) + b2T_ref[...]
    out_ref[...] = logits_t.astype(out_ref.dtype)


def _kernel_token_major(idx_ref, ft_ref, b1_ref, w2_ref, b2_ref, out_ref):
    """Token-major layout: tokens on sublanes, classes on lanes (num_classes >= 128).

    idx_ref : (tile_n, 1)          int32
    ft_ref  : (c_in_pad, hidden)   mxu dt  embedding_table @ W1
    b1_ref  : (1, hidden)          f32
    w2_ref  : (hidden, c_out_pad)  mxu dt
    b2_ref  : (1, c_out_pad)       f32
    out_ref : (tile_n, c_out_pad)  out dt  logits (lane-dense over classes)
    """
    tile_n = idx_ref.shape[0]
    c_in_pad = ft_ref.shape[0]

    idx = idx_ref[...]                                              # (tile_n, 1)
    class_iota = jax.lax.broadcasted_iota(jnp.int32, (tile_n, c_in_pad), 1)
    onehot = (idx == class_iota).astype(ft_ref.dtype)               # (tile_n, c_in_pad)

    pre = jnp.dot(onehot, ft_ref[...],
                  preferred_element_type=jnp.float32) + b1_ref[...]
    h = jnp.tanh(pre)                                               # (tile_n, hidden) f32

    out_ref[...] = (jnp.dot(h.astype(w2_ref.dtype), w2_ref[...],
                            preferred_element_type=jnp.float32)
                    + b2_ref[...]).astype(out_ref.dtype)


# ---------------------------------------------------------------------------
# One-time parameter preparation (hoisted out of the per-call forward)
# ---------------------------------------------------------------------------

class PreparedParams(NamedTuple):
    layout: str            # "class_major" | "token_major"
    num_classes: int
    hidden: int
    c_in_pad: int
    c_out_pad: int
    out_dtype: Any
    ft: jax.Array
    b1: jax.Array
    w2: jax.Array
    b2: jax.Array


def prepare_params(params, *, use_bf16=True, out_dtype=jnp.bfloat16, layout="auto"):
    """Fold embedding into the first Linear, pad/transpose/cast to kernel layout.

    Run once per parameter set; the forward then only streams token indices in
    and logits out.
    """
    table, w1, b1, w2, b2 = params
    num_classes, _num_feats = table.shape
    hidden = w1.shape[1]
    if layout == "auto":
        layout = "class_major" if num_classes < 128 else "token_major"
    mxu_dtype = jnp.bfloat16 if use_bf16 else jnp.float32

    # Algebraic fold: onehot(x) @ table @ W1 == onehot(x) @ (table @ W1).
    fused = jnp.dot(table.astype(jnp.float32), w1.astype(jnp.float32),
                    precision=jax.lax.Precision.HIGHEST)            # (C, H)

    c_in_pad = _round_up(num_classes, 128)     # lane/K pad for the one-hot contraction
    if layout == "class_major":
        # Classes live on sublanes (pad to 8 only), tokens on lanes.
        c_out_pad = _round_up(num_classes, 8)
        ft = (jnp.zeros((hidden, c_in_pad), jnp.float32)
              .at[:, :num_classes].set(fused.T).astype(mxu_dtype))
        b1p = b1.reshape(hidden, 1).astype(jnp.float32)
        w2p = (jnp.zeros((c_out_pad, hidden), jnp.float32)
               .at[:num_classes, :].set(w2.T).astype(mxu_dtype))
        b2p = jnp.zeros((c_out_pad, 1), jnp.float32).at[:num_classes, 0].set(b2)
    else:
        # Classes live on lanes (pad to 128), tokens on sublanes.
        c_out_pad = _round_up(num_classes, 128)
        ft = (jnp.zeros((c_in_pad, hidden), jnp.float32)
              .at[:num_classes, :].set(fused).astype(mxu_dtype))
        b1p = b1.reshape(1, hidden).astype(jnp.float32)
        w2p = (jnp.zeros((hidden, c_out_pad), jnp.float32)
               .at[:, :num_classes].set(w2).astype(mxu_dtype))
        b2p = jnp.zeros((1, c_out_pad), jnp.float32).at[0, :num_classes].set(b2)

    return PreparedParams(layout=layout, num_classes=int(num_classes),
                          hidden=int(hidden), c_in_pad=int(c_in_pad),
                          c_out_pad=int(c_out_pad), out_dtype=out_dtype,
                          ft=ft, b1=b1p, w2=w2p, b2=b2p)


# ---------------------------------------------------------------------------
# Tile / VMEM planning (per-generation via physical VMEM query)
# ---------------------------------------------------------------------------

def _vmem_capacity_bytes():
    try:
        return int(pltpu.get_tpu_info().vmem_capacity_bytes)
    except Exception:
        return 64 << 20        # assume the smallest (v7x per-core) VMEM


def _plan_tiles(prep: PreparedParams, n: int, tile_tokens):
    mxu_b = prep.ft.dtype.itemsize
    out_b = jnp.dtype(prep.out_dtype).itemsize
    hidden, c_in_pad, c_out_pad = prep.hidden, prep.c_in_pad, prep.c_out_pad

    gran = 128 if prep.layout == "class_major" else 8     # token-tile granularity
    max_tile = 2048 if prep.layout == "class_major" else 1024

    # Resident weight/bias blocks (constant index_map); x2 for default double buffering.
    resident = 2 * ((c_in_pad + c_out_pad) * hidden * mxu_b + (hidden + c_out_pad) * 4)
    # Per-token VMEM: double-buffered idx/out tiles + one-hot / iota / h temporaries.
    per_token = (2 * (c_out_pad * out_b + 4)
                 + c_in_pad * (mxu_b + 4)
                 + hidden * (3 * 4 + mxu_b))

    # ~48 MiB usable on v7x (64 MiB physical), ~96 MiB on v5e/v6e (128 MiB physical).
    usable = _vmem_capacity_bytes() * 3 // 4
    budget = max(usable // 2 - resident, gran * per_token)

    tile = tile_tokens if tile_tokens is not None else budget // per_token
    tile = max(gran, (tile // gran) * gran)
    tile = min(tile, max_tile, _round_up(max(n, 1), gran))

    # Keep >= 2 token tiles when possible so ("parallel",) splits the grid
    # across v7x's two TensorCores.
    if n > gran:
        while tile > gran and _round_up(n, tile) // tile < 2:
            tile = max(gran, ((tile // 2) // gran) * gran)

    vmem_limit = int(min(usable, max(16 << 20, 2 * (resident + tile * per_token))))
    return int(tile), vmem_limit


# ---------------------------------------------------------------------------
# Forward
# ---------------------------------------------------------------------------

@functools.partial(jax.jit, static_argnames=("layout", "num_classes", "out_dtype",
                                              "tile_tokens", "vmem_limit"))
def _forward_jit(x_idx, ft, b1, w2, b2, *, layout, num_classes, out_dtype,
                 tile_tokens, vmem_limit):
    batch, seq = x_idx.shape
    n = batch * seq
    tile = tile_tokens
    n_pad = _round_up(max(n, 1), tile)
    flat_idx = x_idx.reshape(-1).astype(jnp.int32)

    if layout == "class_major":
        hidden, c_in_pad = ft.shape
        c_out_pad = w2.shape[0]
        kernel = _kernel_class_major
        # Padded tokens get idx = -1 -> all-zero one-hot; their logit columns
        # are garbage (tanh(b1)@W2+b2) and are trimmed below.
        idx_p = jnp.full((1, n_pad), -1, jnp.int32).at[0, :n].set(flat_idx)
        in_specs = [
            pl.BlockSpec((1, tile), lambda i: (0, i)),        # idx: tiled over tokens
            pl.BlockSpec(ft.shape, lambda i: (0, 0)),         # fused table^T: resident
            pl.BlockSpec(b1.shape, lambda i: (0, 0)),         # b1: resident
            pl.BlockSpec(w2.shape, lambda i: (0, 0)),         # W2^T: resident
            pl.BlockSpec(b2.shape, lambda i: (0, 0)),         # b2: resident
        ]
        out_shape = jax.ShapeDtypeStruct((c_out_pad, n_pad), out_dtype)
        out_spec = pl.BlockSpec((c_out_pad, tile), lambda i: (0, i))
    else:
        c_in_pad, hidden = ft.shape
        c_out_pad = w2.shape[1]
        kernel = _kernel_token_major
        idx_p = jnp.full((n_pad, 1), -1, jnp.int32).at[:n, 0].set(flat_idx)
        in_specs = [
            pl.BlockSpec((tile, 1), lambda i: (i, 0)),
            pl.BlockSpec(ft.shape, lambda i: (0, 0)),
            pl.BlockSpec(b1.shape, lambda i: (0, 0)),
            pl.BlockSpec(w2.shape, lambda i: (0, 0)),
            pl.BlockSpec(b2.shape, lambda i: (0, 0)),
        ]
        out_shape = jax.ShapeDtypeStruct((n_pad, c_out_pad), out_dtype)
        out_spec = pl.BlockSpec((tile, c_out_pad), lambda i: (i, 0))

    weight_bytes = sum(int(a.size) * a.dtype.itemsize for a in (ft, b1, w2, b2))
    cost = pl.CostEstimate(
        flops=2 * n_pad * hidden * (c_in_pad + c_out_pad),
        transcendentals=n_pad * hidden,
        bytes_accessed=(n_pad * 4 + weight_bytes
                        + n_pad * c_out_pad * jnp.dtype(out_dtype).itemsize),
    )

    out = pl.pallas_call(
        kernel,
        out_shape=out_shape,
        grid=(n_pad // tile,),
        in_specs=in_specs,
        out_specs=out_spec,
        compiler_params=pltpu.CompilerParams(
            dimension_semantics=("parallel",),
            vmem_limit_bytes=vmem_limit,
        ),
        cost_estimate=cost,
    )(idx_p, ft, b1, w2, b2)

    # Trim padding (no-op slices when dims are already aligned); transpose the
    # class-major result back to (tokens, classes).
    if layout == "class_major":
        logits = out[:num_classes, :n].T
    else:
        logits = out[:n, :num_classes]
    return logits.reshape(batch, seq, num_classes)


def tree_cnn_embedding_forward(x_idx, prep: PreparedParams, *, tile_tokens=None):
    """x_idx: int array (batch, seq). Returns logits (batch, seq, num_classes)
    in prep.out_dtype (bf16 by default; upcast downstream only if needed)."""
    batch, seq = x_idx.shape
    tile, vmem_limit = _plan_tiles(prep, batch * seq, tile_tokens)
    return _forward_jit(x_idx, prep.ft, prep.b1, prep.w2, prep.b2,
                        layout=prep.layout, num_classes=prep.num_classes,
                        out_dtype=prep.out_dtype, tile_tokens=tile,
                        vmem_limit=vmem_limit)


# ---------------------------------------------------------------------------
# Reference & test harness
# ---------------------------------------------------------------------------

def init_params(key, num_classes, num_feats, hidden_size):
    """Deterministic synthetic parameter init (matches module shapes)."""
    k_emb, k_w1, k_b1, k_w2, k_b2 = jax.random.split(key, 5)
    table = jax.random.normal(k_emb, (num_classes, num_feats), jnp.float32)
    w1 = jax.random.normal(k_w1, (num_feats, hidden_size), jnp.float32) * 0.1
    b1 = jax.random.normal(k_b1, (hidden_size,), jnp.float32) * 0.1
    w2 = jax.random.normal(k_w2, (hidden_size, num_classes), jnp.float32) * 0.1
    b2 = jax.random.normal(k_b2, (num_classes,), jnp.float32) * 0.1
    return table, w1, b1, w2, b2


def reference_forward(x_idx, params):
    table, w1, b1, w2, b2 = params
    emb = table[x_idx]
    h = jnp.tanh(jnp.einsum("bsf,fh->bsh", emb, w1,
                            precision=jax.lax.Precision.HIGHEST) + b1)
    return jnp.einsum("bsh,hc->bsc", h, w2,
                      precision=jax.lax.Precision.HIGHEST) + b2


if __name__ == "__main__":
    num_classes, num_feats, hidden_size = 16, 32, 32
    batch, seq = 2, 8

    key = jax.random.PRNGKey(0)
    k_params, k_idx = jax.random.split(key)
    params = init_params(k_params, num_classes, num_feats, hidden_size)
    x = jax.random.randint(k_idx, (batch, seq), 0, num_classes, dtype=jnp.int32)
    ref = reference_forward(x, params)

    # (a) f32 operands + f32 output, class-major (small-C) layout: tight check.
    prep_f32 = prepare_params(params, use_bf16=False, out_dtype=jnp.float32)
    out_f32 = jax.block_until_ready(tree_cnn_embedding_forward(x, prep_f32))
    assert out_f32.shape == (batch, seq, num_classes)
    assert jnp.allclose(out_f32, ref, atol=1e-3, rtol=1e-3), "f32 class-major mismatch"

    # (b) default fast path: bf16 MXU operands + bf16 logits writeback.
    prep = prepare_params(params)
    out_bf16 = jax.block_until_ready(tree_cnn_embedding_forward(x, prep))
    assert out_bf16.shape == (batch, seq, num_classes)
    assert jnp.allclose(out_bf16.astype(jnp.float32), ref,
                        atol=5e-2, rtol=5e-2), "bf16 class-major mismatch"

    # (c) token-major (large-C) layout exercised at a small C=128 shape.
    C2 = 128
    params2 = init_params(jax.random.PRNGKey(1), C2, num_feats, hidden_size)
    x2 = jax.random.randint(jax.random.PRNGKey(2), (batch, seq), 0, C2, dtype=jnp.int32)
    ref2 = reference_forward(x2, params2)
    prep2 = prepare_params(params2, use_bf16=False, out_dtype=jnp.float32)
    out2 = jax.block_until_ready(tree_cnn_embedding_forward(x2, prep2))
    assert out2.shape == (batch, seq, C2)
    assert jnp.allclose(out2, ref2, atol=1e-3, rtol=1e-3), "f32 token-major mismatch"

    print("KERNEL_OK")
</pallas_src>

<mosaic_0001>
module attributes {stable_mosaic.version = 11 : i64} {
  func.func @_kernel_class_major(%arg0: i32, %arg1: memref<1x128xi32, #tpu.memory_space<vmem>>, %arg2: memref<32x128xf32, #tpu.memory_space<vmem>>, %arg3: memref<32x1xf32, #tpu.memory_space<vmem>>, %arg4: memref<16x32xf32, #tpu.memory_space<vmem>>, %arg5: memref<16x1xf32, #tpu.memory_space<vmem>>, %arg6: memref<16x128xf32, #tpu.memory_space<vmem>>) attributes {dimension_semantics = [#tpu.dimension_semantics<parallel>], iteration_bounds = array<i64: 1>, scalar_prefetch = 0 : i64, scratch_operands = 0 : i64, tpu.core_type = #tpu.core_type<tc>, window_params = [{transform_indices = @transform_0, window_bounds = array<i64: 1, 128>}, {pipeline_mode = #tpu.pipeline_mode<synchronous>, transform_indices = @transform_1, window_bounds = array<i64: 32, 128>}, {pipeline_mode = #tpu.pipeline_mode<synchronous>, transform_indices = @transform_2, window_bounds = array<i64: 32, 1>}, {pipeline_mode = #tpu.pipeline_mode<synchronous>, transform_indices = @transform_3, window_bounds = array<i64: 16, 32>}, {pipeline_mode = #tpu.pipeline_mode<synchronous>, transform_indices = @transform_4, window_bounds = array<i64: 16, 1>}, {transform_indices = @transform_5, window_bounds = array<i64: 16, 128>}]} {
    %c0 = arith.constant 0 : index
    %c0_0 = arith.constant 0 : index
    %0 = vector.load %arg1[%c0, %c0_0] : memref<1x128xi32, #tpu.memory_space<vmem>>, vector<1x128xi32>
    %1 = tpu.iota {dimensions = array<i32: 0>} : vector<128x128xi32>
    %2 = vector.broadcast %0 : vector<1x128xi32> to vector<128x128xi32>
    %3 = arith.cmpi eq, %1, %2 : vector<128x128xi32>
    %4 = arith.extui %3 : vector<128x128xi1> to vector<128x128xi32>
    %5 = arith.sitofp %4 : vector<128x128xi32> to vector<128x128xf32>
    %c0_1 = arith.constant 0 : index
    %c0_2 = arith.constant 0 : index
    %6 = vector.load %arg2[%c0_1, %c0_2] : memref<32x128xf32, #tpu.memory_space<vmem>>, vector<32x128xf32>
    %cst = arith.constant dense<0.000000e+00> : vector<32x128xf32>
    %7 = tpu.matmul %6, %5, %cst {dimension_numbers = #tpu.dot_dimension_numbers<[1], [0], [0], [1], [0, 0, 1, 1], [], []>} : vector<32x128xf32>, vector<128x128xf32>, vector<32x128xf32> -> vector<32x128xf32>
    %c0_3 = arith.constant 0 : index
    %c0_4 = arith.constant 0 : index
    %8 = vector.load %arg3[%c0_3, %c0_4] : memref<32x1xf32, #tpu.memory_space<vmem>>, vector<32x1xf32>
    %9 = vector.broadcast %8 : vector<32x1xf32> to vector<32x128xf32>
    %10 = arith.addf %7, %9 : vector<32x128xf32>
    %11 = math.tanh %10 : vector<32x128xf32>
    %c0_5 = arith.constant 0 : index
    %c0_6 = arith.constant 0 : index
    %12 = vector.load %arg4[%c0_5, %c0_6] : memref<16x32xf32, #tpu.memory_space<vmem>>, vector<16x32xf32>
    %cst_7 = arith.constant dense<0.000000e+00> : vector<16x128xf32>
    %13 = tpu.matmul %12, %11, %cst_7 {dimension_numbers = #tpu.dot_dimension_numbers<[1], [0], [0], [1], [0, 0, 1, 1], [], []>} : vector<16x32xf32>, vector<32x128xf32>, vector<16x128xf32> -> vector<16x128xf32>
    %c0_8 = arith.constant 0 : index
    %c0_9 = arith.constant 0 : index
    %14 = vector.load %arg5[%c0_8, %c0_9] : memref<16x1xf32, #tpu.memory_space<vmem>>, vector<16x1xf32>
    %15 = vector.broadcast %14 : vector<16x1xf32> to vector<16x128xf32>
    %16 = arith.addf %13, %15 : vector<16x128xf32>
    %c0_10 = arith.constant 0 : index
    %c0_11 = arith.constant 0 : index
    %17 = vector.load %arg6[%c0_10, %c0_11] : memref<16x128xf32, #tpu.memory_space<vmem>>, vector<16x128xf32>
    tpu.vector_store %arg6[%c0_10, %c0_11], %16 {strides = array<i32>} : memref<16x128xf32, #tpu.memory_space<vmem>>, vector<16x128xf32>,
    return
  }
  func.func @transform_0(%arg0: i32) -> (i32, i32) {
    %c0_i32 = arith.constant 0 : i32
    %c0_i32_0 = arith.constant 0 : i32
    return %c0_i32, %arg0 : i32, i32
  }
  func.func @transform_1(%arg0: i32) -> (i32, i32) {
    %c0_i32 = arith.constant 0 : i32
    %c0_i32_0 = arith.constant 0 : i32
    %c0_i32_1 = arith.constant 0 : i32
    return %c0_i32, %c0_i32_0 : i32, i32
  }
  func.func @transform_2(%arg0: i32) -> (i32, i32) {
    %c0_i32 = arith.constant 0 : i32
    %c0_i32_0 = arith.constant 0 : i32
    %c0_i32_1 = arith.constant 0 : i32
    return %c0_i32, %c0_i32_0 : i32, i32
  }
  func.func @transform_3(%arg0: i32) -> (i32, i32) {
    %c0_i32 = arith.constant 0 : i32
    %c0_i32_0 = arith.constant 0 : i32
    %c0_i32_1 = arith.constant 0 : i32
    return %c0_i32, %c0_i32_0 : i32, i32
  }
  func.func @transform_4(%arg0: i32) -> (i32, i32) {
    %c0_i32 = arith.constant 0 : i32
    %c0_i32_0 = arith.constant 0 : i32
    %c0_i32_1 = arith.constant 0 : i32
    return %c0_i32, %c0_i32_0 : i32, i32
  }
  func.func @transform_5(%arg0: i32) -> (i32, i32) {
    %c0_i32 = arith.constant 0 : i32
    %c0_i32_0 = arith.constant 0 : i32
    return %c0_i32, %arg0 : i32, i32
  }
}

</mosaic_0001>

<bundles_post_ra>
// kernel: _forward_jit.1
= control target key start
LH: loop header
LB: loop body
LE: loop exit
PB: predicated region body
PF: predicated region fallthrough
CT: control target
= control target key end

     0   :  { %v21_v0 = vlaneseq  ;;  %v278_v7 = vmov 1.0   ;;  %v279_v11 = vmov 0   ;;  %s451_s0 = inlined_call_operand.vmem [shape: s32[1,128], index: 0, kind: input, shape index: {}]   ;;  %s452_s2 = inlined_call_operand.vmem [shape: f32[32,1], index: 2, kind: input, shape index: {}]   ;;  %s453_s1 = inlined_call_operand.vmem [shape: f32[32,128], index: 1, kind: input, shape index: {}]   ;;  %s454_s4 = inlined_call_operand.vmem [shape: f32[16,1], index: 4, kind: input, shape index: {}]   ;;  %s455_s3 = inlined_call_operand.vmem [shape: f32[16,32], index: 3, kind: input, shape index: {}]   ;;  %s456_s5 = inlined_call_operand.vmem [shape: f32[16,128], index: 5, kind: output, shape index: {}]  }
   0x1   :  { %v315_v2 = vld [vmem:[%s451_s0] ss:$0 sm:$0xff]  ;;  %266 = vset.pattern.permute.xlu0 %v279_v11  ;;  %v94_v13 = vld [vmem:[%s452_s2 + $0x18] sm:$0xff]  ;;  %267 = vset.pattern.permute.xlu1 %v279_v11  ;;  %v92_v14 = vld [vmem:[%s452_s2 + $0x8] sm:$0xff] }
   0x2   :  { %v310_v1 = vshrl.u32 %v21_v0, 7  ;;  %112 = vperm.xlu0 %266, %v94_v13   ;;  %102 = vperm.xlu1 %267, %v92_v14   ;;  %v93_v18 = vld [vmem:[%s452_s2 + $0x10] sm:$0xff]  ;;  %v91_v20 = vld [vmem:[%s452_s2] sm:$0xff]  ;;  %v88_v25 = vld [vmem:[%s453_s1 + $0x8] sm:$0xff] }
   0x3   :  { %268 = vset.pattern.permute.xlu2 %v279_v11  ;;  %v89_v24 = vld [vmem:[%s453_s1 + $0x10] sm:$0xff]  ;;  %v87_v26 = vld [vmem:[%s453_s1] sm:$0xff]  ;;  %v90_v27 = vld [vmem:[%s453_s1 + $0x18] sm:$0xff] }
   0x4   :  { %v37_v3 = vadd.s32 120, %v310_v1  ;;  %v36_v4 = vadd.s32 112, %v310_v1  ;;  %v35_v5 = vadd.s32 104, %v310_v1  ;;  %v34_v6 = vadd.s32 96, %v310_v1  ;;  %v150_v31 = vld [vmem:[%s454_s4] sm:$0xff]  ;;  %v151_v33 = vld [vmem:[%s454_s4 + $0x8] sm:$0xff] }
   0x5   :  { %v33_v8 = vadd.s32 88, %v310_v1  ;;  %v32_v9 = vadd.s32 80, %v310_v1  ;;  %v31_v10 = vadd.s32 72, %v310_v1  ;;  %v30_v12 = vadd.s32 64, %v310_v1  ;;  %154 = vperm.xlu2 %268, %v150_v31   ;;  %v148_v45 = vld [vmem:[%s455_s3] sm:$0xff]  ;;  %v149_v47 = vld [vmem:[%s455_s3 + $0x8] sm:$0xff] }
   0x6   :  { %vm54_vm0 = vcmp.eq.s32.totalorder %v37_v3, %v315_v2  ;;  %vm53_vm1 = vcmp.eq.s32.totalorder %v36_v4, %v315_v2  ;;  %vm52_vm2 = vcmp.eq.s32.totalorder %v35_v5, %v315_v2  ;;  %vm51_vm3 = vcmp.eq.s32.totalorder %v34_v6, %v315_v2 }
   0x7   :  { %233 = vmatpush.msk.msra.mxu3 %vm54_vm0, %v278_v7  ;;  %232 = vmatpush.msk.msra.mxu2 %vm54_vm0, %v278_v7  ;;  %vm50_vm4 = vcmp.eq.s32.totalorder %v33_v8, %v315_v2  ;;  %vm49_vm5 = vcmp.eq.s32.totalorder %v32_v9, %v315_v2  ;;  %vm48_vm6 = vcmp.eq.s32.totalorder %v31_v10, %v315_v2  ;;  %v29_v15 = vadd.s32 56, %v310_v1 }
   0x8   :  { %214 = vmatpush.msk.msra.mxu0 %vm54_vm0, %v278_v7  ;;  %vm47_vm7 = vcmp.eq.s32.totalorder %v30_v12, %v315_v2  ;;  %v28_v16 = vadd.s32 48, %v310_v1  ;;  %v27_v17 = vadd.s32 40, %v310_v1  ;;  %v26_v19 = vadd.s32 32, %v310_v1 }
   0x9   :  { %235 = vmatpush.msk.msra.mxu3 %vm53_vm1, %v278_v7  ;;  %234 = vmatpush.msk.msra.mxu2 %vm53_vm1, %v278_v7  ;;  %vm46_vm8 = vcmp.eq.s32.totalorder %v29_v15, %v315_v2  ;;  %v25_v21 = vadd.s32 24, %v310_v1  ;;  %v24_v22 = vadd.s32 16, %v310_v1  ;;  %v23_v23 = vadd.s32 8, %v310_v1 }
   0xa   :  { %215 = vmatpush.msk.msra.mxu0 %vm53_vm1, %v278_v7  ;;  %vm45_vm9 = vcmp.eq.s32.totalorder %v28_v16, %v315_v2  ;;  %vm44_vm10 = vcmp.eq.s32.totalorder %v27_v17, %v315_v2  ;;  %107 = vperm.xlu0 %266, %v93_v18   ;;  %vm43_vm11 = vcmp.eq.s32.totalorder %v26_v19, %v315_v2  ;;  %vm162_vm0 = vcmask 261120  }
   0xb   :  { %237 = vmatpush.msk.msra.mxu3 %vm52_vm2, %v278_v7  ;;  %236 = vmatpush.msk.msra.mxu2 %vm52_vm2, %v278_v7  ;;  %vm42_vm12 = vcmp.eq.s32.totalorder %v25_v21, %v315_v2  ;;  %vm41_vm13 = vcmp.eq.s32.totalorder %v24_v22, %v315_v2  ;;  %vm40_vm14 = vcmp.eq.s32.totalorder %v23_v23, %v315_v2 }
   0xc   :  { %216 = vmatpush.msk.msra.mxu0 %vm52_vm2, %v278_v7  ;;  %97 = vperm.xlu1 %267, %v91_v20   ;;  %vm39_vm15 = vcmp.eq.s32.totalorder %v310_v1, %v315_v2 }
   0xd   :  { %239 = vmatpush.msk.msra.mxu3 %vm51_vm3, %v278_v7  ;;  %238 = vmatpush.msk.msra.mxu2 %vm51_vm3, %v278_v7 }
   0xe   :  { %217 = vmatpush.msk.msra.mxu0 %vm51_vm3, %v278_v7  ;;  %159 = vperm.xlu2 %268, %v151_v33  }
   0xf   :  { %241 = vmatpush.msk.msra.mxu3 %vm50_vm4, %v278_v7  ;;  %240 = vmatpush.msk.msra.mxu2 %vm50_vm4, %v278_v7 }
  0x10   :  { %218 = vmatpush.msk.msra.mxu0 %vm50_vm4, %v278_v7 }
  0x11   :  { %243 = vmatpush.msk.msra.mxu3 %vm49_vm5, %v278_v7  ;;  %242 = vmatpush.msk.msra.mxu2 %vm49_vm5, %v278_v7 }
  0x12   :  { %219 = vmatpush.msk.msra.mxu0 %vm49_vm5, %v278_v7 }
  0x13   :  { %245 = vmatpush.msk.msra.mxu3 %vm48_vm6, %v278_v7  ;;  %244 = vmatpush.msk.msra.mxu2 %vm48_vm6, %v278_v7 }
  0x14   :  { %220 = vmatpush.msk.msra.mxu0 %vm48_vm6, %v278_v7 }
  0x15   :  { %247 = vmatpush.msk.msra.mxu3 %vm47_vm7, %v278_v7  ;;  %246 = vmatpush.msk.msra.mxu2 %vm47_vm7, %v278_v7 }
  0x16   :  { %221 = vmatpush.msk.msra.mxu0 %vm47_vm7, %v278_v7 }
  0x17   :  { %249 = vmatpush.msk.msra.mxu3 %vm46_vm8, %v278_v7  ;;  %248 = vmatpush.msk.msra.mxu2 %vm46_vm8, %v278_v7 }
  0x18   :  { %222 = vmatpush.msk.msra.mxu0 %vm46_vm8, %v278_v7 }
  0x19   :  { %251 = vmatpush.msk.msra.mxu3 %vm45_vm9, %v278_v7  ;;  %250 = vmatpush.msk.msra.mxu2 %vm45_vm9, %v278_v7 }
  0x1a   :  { %223 = vmatpush.msk.msra.mxu0 %vm45_vm9, %v278_v7 }
  0x1b   :  { %253 = vmatpush.msk.msra.mxu3 %vm44_vm10, %v278_v7  ;;  %252 = vmatpush.msk.msra.mxu2 %vm44_vm10, %v278_v7 }
  0x1c   :  { %224 = vmatpush.msk.msra.mxu0 %vm44_vm10, %v278_v7 }
  0x1d   :  { %255 = vmatpush.msk.msra.mxu3 %vm43_vm11, %v278_v7  ;;  %254 = vmatpush.msk.msra.mxu2 %vm43_vm11, %v278_v7 }
  0x1e   :  { %225 = vmatpush.msk.msra.mxu0 %vm43_vm11, %v278_v7 }
  0x1f   :  { %257 = vmatpush.msk.msra.mxu3 %vm42_vm12, %v278_v7  ;;  %256 = vmatpush.msk.msra.mxu2 %vm42_vm12, %v278_v7 }
  0x20   :  { %226 = vmatpush.msk.msra.mxu0 %vm42_vm12, %v278_v7 }
  0x21   :  { %259 = vmatpush.msk.msra.mxu3 %vm41_vm13, %v278_v7  ;;  %258 = vmatpush.msk.msra.mxu2 %vm41_vm13, %v278_v7 }
  0x22   :  { %227 = vmatpush.msk.msra.mxu0 %vm41_vm13, %v278_v7 }
  0x23   :  { %261 = vmatpush.msk.msra.mxu3 %vm40_vm14, %v278_v7  ;;  %260 = vmatpush.msk.msra.mxu2 %vm40_vm14, %v278_v7 }
  0x24   :  { %228 = vmatpush.msk.msra.mxu0 %vm40_vm14, %v278_v7 }
  0x25   :  { %263 = vmatpush.msk.msra.mxu3 %vm39_vm15, %v278_v7  ;;  %262 = vmatpush.msk.msra.mxu2 %vm39_vm15, %v278_v7 }
  0x26   :  { %137 = vmatmul.f32.vlgmr.msra.gmra.mxu3 %v89_v24  ;;  %134 = vmatmul.f32.vlgmr.msra.gmra.mxu2 %v88_v25 }
  0x27   :  { %229 = vmatpush.msk.msra.mxu0 %vm39_vm15, %v278_v7 }
  0x28   :  { %131 = vmatmul.f32.vlgmr.msra.gmra.mxu0 %v87_v26 }
  0x2e   :  { %140 = vmatmul.f32.gmra.mxu3 %v90_v27 }
  0x5f   :  { %v155_v48 = vpop.permute.xlu2 %154 }
  0x68   :  { %v160_v51 = vpop.permute.xlu2 %159 }
  0x74   :  { %v113_v28 = vpop.permute.xlu0 %112  ;;  %v103_v29 = vpop.permute.xlu1 %102 }
  0x7c   :  { %v108_v32 = vpop.permute.xlu0 %107 }
  0x7e   :  { %v98_v38 = vpop.permute.xlu1 %97 }
  0xa5   :  { %v132_v39 = vpop.f32.mrf.mxu0 }
  0xa6   :  { %v133_v41 = vadd.f32 %v132_v39, %v98_v38 }
  0xa9   :  { %v138_v30 = vpop.f32.mrf.mxu3  ;;  %v135_v34 = vpop.f32.mrf.mxu2 }
  0xaa   :  { %v139_v36 = vadd.f32 %v138_v30, %v108_v32  ;;  %v136_v40 = vadd.f32 %v135_v34, %v103_v29 }
  0xb1   :  { %v141_v35 = vpop.f32.mrf.mxu3 }
  0xb2   :  { %v142_v37 = vadd.f32 %v141_v35, %v113_v28 }
  0xb4   :  { %270 = vtanh.f32 %v142_v37 }
  0xb5   :  { %272 = vtanh.f32 %v139_v36 }
  0xb6   :  { %274 = vtanh.f32 %v136_v40 }
  0xb7   :  { %276 = vtanh.f32 %v133_v41 }
  0xba   :  { %v271_v42 = vpop.eup %270 }
  0xbb   :  { %181 = vmatpush.msra.mxu1 %v271_v42  ;;  %v273_v43 = vpop.eup %272 }
  0xbc   :  { %v275_v44 = vpop.eup %274 }
  0xbd   :  { %182 = vmatpush.msra.mxu1 %v273_v43  ;;  %v277_v46 = vpop.eup %276 }
  0xbf   :  { %183 = vmatpush.msra.mxu1 %v275_v44 }
  0xc1   :  { %184 = vmatpush.msra.mxu1 %v277_v46 }
  0xc2   :  { %230 = vmatmul.msk.f32.vlgmr.msra.gmra.mxu1 %vm162_vm0, %v148_v45 }
  0xca   :  { %231 = vmatmul.msk.f32.gmra.mxu1 %vm162_vm0, %v149_v47 }
 0x13f   :  { %v186_v49 = vpop.f32.mrf.mxu1 }
 0x140   :  { %v187_v50 = vadd.f32 %v186_v49, %v155_v48 }
 0x142   :  { %192 = vst [vmem:[%s456_s5] sm:$0xff] %v187_v50 }
 0x147   :  { %v189_v52 = vpop.f32.mrf.mxu1 }
 0x148   :  { %v190_v53 = vadd.f32 %v189_v52, %v160_v51 }
 0x14a   :  { %193 = vst [vmem:[%s456_s5 + $0x8] sm:$0xff] %v190_v53 }

</bundles_post_ra>
